<compile_context>
chip_gen: v7x
topology: tpu7x:2x2x1
jax: 0.10.0
libtpu: 0.0.40
codegen_flags: <defaults>
</compile_context>

<pallas_src>
import math

import jax
import jax.numpy as jnp
from jax.experimental import pallas as pl
from jax.experimental.pallas import tpu as pltpu


def _augmix_kernel(c_ref, *refs):
    # c_ref : VMEM (TN, K+1) f32, c[:, 0] = 1-m, c[:, 1+i] = m*w[:, i]
    # refs  : (x0_ref, ..., xK_ref, o_ref), each VMEM (TN, TD)
    x_refs, o_ref = refs[:-1], refs[-1]
    coeffs = c_ref[...]                                  # one tiny VMEM load
    acc = coeffs[:, 0:1] * x_refs[0][...].astype(jnp.float32)
    for v in range(1, len(x_refs)):                      # static K -> unrolled
        acc = acc + coeffs[:, v:v + 1] * x_refs[v][...].astype(jnp.float32)
    o_ref[...] = acc.astype(o_ref.dtype)


def _round_up(x, m):
    return ((x + m - 1) // m) * m


def _cdiv(a, b):
    return -(-a // b)


def _vmem_capacity_bytes():
    # Hardware query; fall back to the smallest per-core VMEM of the supported
    # generations (v7x: 64 MiB) if the query is unavailable.
    try:
        return int(pltpu.get_tpu_info().vmem_capacity_bytes)
    except Exception:
        return 64 * 1024 * 1024


def augmix_forward(xs, w, m, *, tn=None, td_max=16384):
    """xs = (x_ori, x_aug1, ..., x_augK), each (N, W, H, C); w (N, K); m (N,)."""
    x_ori = xs[0]
    if not jnp.issubdtype(x_ori.dtype, jnp.floating):
        raise TypeError(
            f"augmix_forward requires floating-point images, got {x_ori.dtype}")
    orig_shape = x_ori.shape
    N = orig_shape[0]
    D = math.prod(orig_shape[1:])
    K = len(xs) - 1
    if w.shape != (N, K):
        raise ValueError(f"w must have shape {(N, K)}, got {w.shape}")
    if m.shape != (N,):
        raise ValueError(f"m must have shape {(N,)}, got {m.shape}")

    # Host-side coefficient folding: out = sum_v c[:, v] * view_v (view_0=x_ori).
    m_col = m.astype(jnp.float32).reshape(N, 1)
    c = jnp.concatenate([1.0 - m_col, m_col * w.astype(jnp.float32)], axis=1)

    # Flatten each view (pure reshape -- no stacked copy, no padding).
    flats = [x.reshape(N, D) for x in xs]

    # --- tile sizing ---------------------------------------------------------
    vmem_cap = _vmem_capacity_bytes()
    if tn is None:
        tn = 64 if vmem_cap >= 100 * 1024 * 1024 else 32     # v5e/v6e vs v7x
    vmem_limit = min(vmem_cap * 3 // 4, 96 * 1024 * 1024)

    # Rows: full batch if small (full-extent block is exempt from the 8-rule),
    # else a multiple-of-8/16 row tile; ragged last block handled by clamped
    # boundary DMAs.
    TN = N if N <= tn else tn
    rows = _cdiv(N, TN)

    # Columns: one full-extent block when D fits a single tile (zero padding);
    # otherwise balanced 128-multiple tiles (padding bounded to the last tile).
    D128 = _round_up(D, 128)
    n_col = _cdiv(D128, td_max)
    if rows == 1 and n_col == 1 and D128 >= 256:
        n_col = 2            # v7x megacore: give the second TensorCore a block
    if n_col == 1:
        TD = D               # full-extent: exempt from the 128 constraint
    else:
        TD = _round_up(_cdiv(D128, n_col), 128)   # always <= D here
    cols = _cdiv(D, TD)

    grid = (rows, cols)      # j (D axis) innermost -> coefficient DMA reused
    img_spec = pl.BlockSpec((TN, TD), lambda i, j: (i, j))
    c_spec = pl.BlockSpec((TN, K + 1), lambda i, j: (i, 0))

    out = pl.pallas_call(
        _augmix_kernel,
        out_shape=jax.ShapeDtypeStruct((N, D), x_ori.dtype),
        grid_spec=pl.GridSpec(
            grid=grid,
            in_specs=[c_spec] + [img_spec] * (K + 1),
            out_specs=img_spec,
        ),
        compiler_params=pltpu.CompilerParams(
            dimension_semantics=("parallel", "parallel"),
            vmem_limit_bytes=vmem_limit,
        ),
    )(c, *flats)

    return out.reshape(orig_shape)


def _reference(xs, w, m):
    x_ori = xs[0].astype(jnp.float32)
    N = x_ori.shape[0]
    bshape = (N,) + (1,) * (x_ori.ndim - 1)
    x_mix = jnp.zeros_like(x_ori)
    for i, x_aug in enumerate(xs[1:]):
        x_mix = x_mix + (w[:, i].astype(jnp.float32).reshape(bshape)
                         * x_aug.astype(jnp.float32))
    m_b = m.astype(jnp.float32).reshape(bshape)
    return (1.0 - m_b) * x_ori + m_b * x_mix


if __name__ == "__main__":
    mixture_width = 3

    def make_case(seed, N, W, H, C, dtype=jnp.float32):
        key = jax.random.PRNGKey(seed) if seed else jax.random.PRNGKey(0)
        ks = jax.random.split(key, mixture_width + 3)
        xs = tuple(
            jax.random.uniform(ks[i], (N, W, H, C)).astype(dtype)
            for i in range(mixture_width + 1)
        )
        # TODO(synk): Dirichlet/Beta sampling (the module's stochastic part)
        # stays in plain JAX on the host; the mixing hot path is the kernel.
        w = jax.random.dirichlet(
            ks[-2], jnp.ones((mixture_width,), jnp.float32), shape=(N,))
        m = jax.random.beta(ks[-1], 1.0, 1.0, shape=(N,))
        return xs, w, m

    def check(xs, w, m, atol, **kw):
        out = jax.block_until_ready(augmix_forward(xs, w, m, **kw))
        ref = _reference(xs, w, m)
        assert out.shape == xs[0].shape and out.dtype == xs[0].dtype
        err = jnp.max(jnp.abs(out.astype(jnp.float32) - ref))
        assert jnp.allclose(out.astype(jnp.float32), ref,
                            atol=atol, rtol=1e-5), float(err)

    # 1) Primary: aligned D (16*16*4 = 1024), tiny batch -> forced 2-way D
    #    split so both v7x TensorCores get a block (grid (1, 2)).
    check(*make_case(0, 2, 16, 16, 4), atol=1e-5)

    # 2) Unaligned small D (5*7*3 = 105): single full-extent block, no padding.
    check(*make_case(1, 10, 5, 7, 3), atol=1e-5)

    # 3) N > row tile: ragged last row block handled by boundary clamping.
    check(*make_case(2, 40, 8, 8, 3), atol=1e-5, tn=32)

    # 4) Multiple column tiles with a ragged last D tile (small td_max to
    #    exercise the multi-tile path at toy size).
    check(*make_case(3, 4, 5, 7, 9), atol=1e-5, td_max=256)

    # 5) bf16 in/out (f32 accumulation inside the kernel).
    check(*make_case(4, 16, 16, 16, 4, dtype=jnp.bfloat16), atol=2e-2)

    print("KERNEL_OK")
</pallas_src>

<mosaic_0001>
module attributes {stable_mosaic.version = 11 : i64} {
  func.func @_augmix_kernel(%arg0: i32, %arg1: i32, %arg2: memref<2x4xf32, #tpu.memory_space<vmem>>, %arg3: memref<2x512xf32, #tpu.memory_space<vmem>>, %arg4: memref<2x512xf32, #tpu.memory_space<vmem>>, %arg5: memref<2x512xf32, #tpu.memory_space<vmem>>, %arg6: memref<2x512xf32, #tpu.memory_space<vmem>>, %arg7: memref<2x512xf32, #tpu.memory_space<vmem>>) attributes {dimension_semantics = [#tpu.dimension_semantics<parallel>, #tpu.dimension_semantics<parallel>], iteration_bounds = array<i64: 1, 2>, scalar_prefetch = 0 : i64, scratch_operands = 0 : i64, tpu.core_type = #tpu.core_type<tc>, window_params = [{transform_indices = @transform_0, window_bounds = array<i64: 2, 4>}, {transform_indices = @transform_1, window_bounds = array<i64: 2, 512>}, {transform_indices = @transform_2, window_bounds = array<i64: 2, 512>}, {transform_indices = @transform_3, window_bounds = array<i64: 2, 512>}, {transform_indices = @transform_4, window_bounds = array<i64: 2, 512>}, {transform_indices = @transform_5, window_bounds = array<i64: 2, 512>}]} {
    %c0 = arith.constant 0 : index
    %c0_0 = arith.constant 0 : index
    %0 = vector.load %arg2[%c0, %c0_0] : memref<2x4xf32, #tpu.memory_space<vmem>>, vector<2x4xf32>
    %1 = vector.extract_strided_slice %0 {offsets = [0, 0], sizes = [2, 1], strides = [1, 1]} : vector<2x4xf32> to vector<2x1xf32>
    %c0_1 = arith.constant 0 : index
    %c0_2 = arith.constant 0 : index
    %2 = vector.load %arg3[%c0_1, %c0_2] : memref<2x512xf32, #tpu.memory_space<vmem>>, vector<2x512xf32>
    %3 = vector.broadcast %1 : vector<2x1xf32> to vector<2x512xf32>
    %4 = arith.mulf %3, %2 : vector<2x512xf32>
    %5 = vector.extract_strided_slice %0 {offsets = [0, 1], sizes = [2, 1], strides = [1, 1]} : vector<2x4xf32> to vector<2x1xf32>
    %c0_3 = arith.constant 0 : index
    %c0_4 = arith.constant 0 : index
    %6 = vector.load %arg4[%c0_3, %c0_4] : memref<2x512xf32, #tpu.memory_space<vmem>>, vector<2x512xf32>
    %7 = vector.broadcast %5 : vector<2x1xf32> to vector<2x512xf32>
    %8 = arith.mulf %7, %6 : vector<2x512xf32>
    %9 = arith.addf %4, %8 : vector<2x512xf32>
    %10 = vector.extract_strided_slice %0 {offsets = [0, 2], sizes = [2, 1], strides = [1, 1]} : vector<2x4xf32> to vector<2x1xf32>
    %c0_5 = arith.constant 0 : index
    %c0_6 = arith.constant 0 : index
    %11 = vector.load %arg5[%c0_5, %c0_6] : memref<2x512xf32, #tpu.memory_space<vmem>>, vector<2x512xf32>
    %12 = vector.broadcast %10 : vector<2x1xf32> to vector<2x512xf32>
    %13 = arith.mulf %12, %11 : vector<2x512xf32>
    %14 = arith.addf %9, %13 : vector<2x512xf32>
    %15 = vector.extract_strided_slice %0 {offsets = [0, 3], sizes = [2, 1], strides = [1, 1]} : vector<2x4xf32> to vector<2x1xf32>
    %c0_7 = arith.constant 0 : index
    %c0_8 = arith.constant 0 : index
    %16 = vector.load %arg6[%c0_7, %c0_8] : memref<2x512xf32, #tpu.memory_space<vmem>>, vector<2x512xf32>
    %17 = vector.broadcast %15 : vector<2x1xf32> to vector<2x512xf32>
    %18 = arith.mulf %17, %16 : vector<2x512xf32>
    %19 = arith.addf %14, %18 : vector<2x512xf32>
    %c0_9 = arith.constant 0 : index
    %c0_10 = arith.constant 0 : index
    %20 = vector.load %arg7[%c0_9, %c0_10] : memref<2x512xf32, #tpu.memory_space<vmem>>, vector<2x512xf32>
    tpu.vector_store %arg7[%c0_9, %c0_10], %19 {strides = array<i32>} : memref<2x512xf32, #tpu.memory_space<vmem>>, vector<2x512xf32>,
    return
  }
  func.func @transform_0(%arg0: i32, %arg1: i32) -> (i32, i32) {
    %c0_i32 = arith.constant 0 : i32
    %c0_i32_0 = arith.constant 0 : i32
    return %arg0, %c0_i32 : i32, i32
  }
  func.func @transform_1(%arg0: i32, %arg1: i32) -> (i32, i32) {
    %c0_i32 = arith.constant 0 : i32
    return %arg0, %arg1 : i32, i32
  }
  func.func @transform_2(%arg0: i32, %arg1: i32) -> (i32, i32) {
    %c0_i32 = arith.constant 0 : i32
    return %arg0, %arg1 : i32, i32
  }
  func.func @transform_3(%arg0: i32, %arg1: i32) -> (i32, i32) {
    %c0_i32 = arith.constant 0 : i32
    return %arg0, %arg1 : i32, i32
  }
  func.func @transform_4(%arg0: i32, %arg1: i32) -> (i32, i32) {
    %c0_i32 = arith.constant 0 : i32
    return %arg0, %arg1 : i32, i32
  }
  func.func @transform_5(%arg0: i32, %arg1: i32) -> (i32, i32) {
    %c0_i32 = arith.constant 0 : i32
    return %arg0, %arg1 : i32, i32
  }
}

</mosaic_0001>

<bundles_post_ra>
// kernel: tpu_custom_call.1
= control target key start
LH: loop header
LB: loop body
LE: loop exit
PB: predicated region body
PF: predicated region fallthrough
CT: control target
= control target key end

     0   :  { %s1494_s0 = inlined_call_operand.hbm [shape: f32[2,4], index: 0, kind: input, shape index: {}]   ;;  %s1495_s1 = inlined_call_operand.hbm [shape: f32[2,1024], index: 1, kind: input, shape index: {}]   ;;  %s1496_s2 = inlined_call_operand.hbm [shape: f32[2,1024], index: 2, kind: input, shape index: {}]   ;;  %s1497_s3 = inlined_call_operand.hbm [shape: f32[2,1024], index: 3, kind: input, shape index: {}]   ;;  %s1498_s4 = inlined_call_operand.hbm [shape: f32[2,1024], index: 4, kind: input, shape index: {}]   ;;  %s1499_s5 = inlined_call_operand.hbm [shape: f32[2,1024], index: 5, kind: output, shape index: {}]  }
   0x1   :  { %1516 = sst [smem:[#allocation21_spill]] %s1495_s1 }
   0x2   :  { %1517 = sst [smem:[#allocation22_spill]] %s1497_s3 }
   0x3   :  { %10 = vsyncpa [#allocation3], 0 }
   0x4   :  { %11 = vsyncpa [#allocation6], 0 }
   0x5   :  { %13 = vsyncpa [#allocation6 + $0x1], 0 }
   0x6   :  { %14 = vsyncpa [#allocation9], 0 }
   0x7   :  { %16 = vsyncpa [#allocation9 + $0x1], 0 }
   0x8   :  { %17 = vsyncpa [#allocation4], 0 }
   0x9   :  { %19 = vsyncpa [#allocation4 + $0x1], 0  ;;  %s1169_s18 = smov 0   ;;  %s1171_s19 = smov 0  }
   0xa   :  { %s1173_s20 = smov 0   ;;  %s1175_s21 = smov 0  }
   0xb   :  { %s1177_s22 = smov 0   ;;  %s1179_s23 = smov 0  }
   0xc LB: > { %1518 = sst [smem:[#allocation16_spill]] %s1114_s20  ;;  %s34_s24 = sadd.s32 1, %s1122_s22  ;;  %s1126_s23 = sphi %s1179_s23, %s25_s23   ;;  %s1122_s22 = sphi %s1177_s22, %s1548_s22   ;;  %s1118_s21 = sphi %s1175_s21, %s1547_s21   ;;  %s1114_s20 = sphi %s1173_s20, %s1546_s20   ;;  %s1110_s19 = sphi %s1171_s19, %s1550_s19   ;;  %s1106_s18 = sphi %s1169_s18, %s1549_s18  }
   0xd   : > { %1519 = sst [smem:[#allocation17_spill]] %s1122_s22  ;;  %s72_s25 = sadd.s32 1, %s1114_s20 }
   0xe   : > { %1520 = sst [smem:[#allocation18_spill]] %s1126_s23  ;;  %p35_p0 = scmp.ge.s32.totalorder %s34_s24, 2 }
   0xf   : > { %p1500_p1 = scmp.ne.s32.totalorder %s1114_s20, %s1110_s19  ;;  %p80_p2 = scmp.eq.s32.totalorder %s1126_s23, 0 }
  0x10   : > { %s1552_s24 = smov (%p35_p0, %s34_s24), 0  ;;  %p822_p5 = scmp.lt.s32.totalorder %s1126_s23, 2 }
  0x11   : > { %1521 = sst [smem:[#allocation19_spill]] %s1552_s24  ;;  %p81_p4 = por %p80_p2, %p1500_p1 }
  0x12   : > { %s68_s26 = ssub.s32 %s1122_s22, %s1552_s24  ;;  %s234_s27 = sand.u32 1, %s1126_s23  }
  0x13   : > { %p70_p6 = scmp.eq.s32.totalorder %s68_s26, 0  ;;  %s236_s28 = sand.u32 1, %s1114_s20  }
  0x14   : > { %s1216_s29 = sshll.u32 %s1122_s22, 7  ;;  %s1221_s6 = sshll.u32 %s236_s28, 3 }
  0x15   : > { %s1219_s30 = scalar_select %p70_p6, %s1114_s20, %s72_s25  }
  0x16   : > { %s1523_s1 = sld [smem:[#allocation21_spill]]  ;;  %p1229_p7 = pnand %p822_p5, %p81_p4 }
  0x17   : > { %1522 = sst [smem:[#allocation20_spill]] %s1219_s30  ;;  %s238_s11 = scalar_lea.vmem [#allocation5], %s1221_s6 }
  0x18   : > { %s1524_s10 = scalar_select %p1229_p7, 1, 0 }
  0x19   : > { %s248_s12 = sshll.u32 %s238_s11, 4  ;;  %s1238_s13 = scalar_lea.sflag [#allocation6], %s234_s27  ;;  %s1234_s12 = int_to_ptr.vmem [resolvable:$true] %s248_s12 }
  0x1a   : > { %p1244_p9 = pneg %p1229_p7 }
  0x1c   : > { %s1227_s9 = scalar_lea.hbm %s1523_s1, %s1216_s29  ;;  %s893_s25 = scalar_lea.hbm %s1523_s1, 256 }
  0x1d   : > { %s888_s14 = scalar_lea.hbm %s1227_s9, 128  ;;  %p894_p12 = scmp.lt.u32.totalorder %s1227_s9, %s1523_s1 }
  0x1e   : > { %p889_p8 = scmp.ne.s32.totalorder %s1227_s9, %s888_s14  ;;  %p895_p13 = scmp.lt.u32.totalorder %s893_s25, %s888_s14 }
  0x1f   : > { %s1525_s15 = scalar_select %p1244_p9, 1, 0 }
  0x20   : > { %p891_p10 = pnand %p1244_p9, %p889_p8  ;;  %p896_p0 = por %p895_p13, %p894_p12 }
  0x21   : > { %p897_p2 = scmp.lt.u32.totalorder %s888_s14, %s1227_s9 }
  0x22   : > { %p892_p11 = pneg %p891_p10 }
  0x23   : > { %p898_p4 = por %p897_p2, %p896_p0 }
  0x25   : > { %p899_p5 = pnand %p898_p4, %p892_p11 }
  0x27   : > { %902 = shalt.err (!%p899_p5)
}
  0x28   : > { %s903_s7 = scalar_lea.vmem %s1234_s12, 128  ;;  %s1128_s8 = smov [#allocation5]  }
  0x29   : > { %p904_p6 = scmp.ne.s32.totalorder %s1234_s12, %s903_s7  ;;  %s908_s11 = sshll.u32 %s1128_s8, 4  ;;  %s909_s11 = int_to_ptr.vmem [resolvable:$false] %s908_s11 }
  0x2a   : > { %s910_s16 = scalar_lea.vmem %s909_s11, 256  ;;  %p911_p3 = scmp.lt.s32.totalorder %s1234_s12, %s909_s11 }
  0x2b   : > { %p906_p8 = pnand %p904_p6, %p1244_p9  ;;  %p912_p1 = scmp.lt.s32.totalorder %s910_s16, %s903_s7 }
  0x2d   : > { %p907_p10 = pneg %p906_p8  ;;  %p913_p12 = por %p912_p1, %p911_p3 }
  0x2f   : > { %p914_p13 = pnand %p913_p12, %p907_p10 }
  0x31   : > { %917 = shalt.err (!%p914_p13)
}
  0x32   : > { %807 = dma.hbm_to_vmem [thread:$0]  (!%p1229_p7), %s1227_s9, 128, %s1234_s12, %s1238_s13  }
  0x33   : > { %s1526_s3 = sld [smem:[#allocation22_spill]]  ;;  %s280_s26 = scalar_lea.vmem [#allocation8], %s1221_s6 }
  0x34   : > { %s290_s28 = sshll.u32 %s280_s26, 4  ;;  %s1277_s7 = scalar_lea.sflag [#allocation9], %s234_s27  ;;  %s291_s28 = int_to_ptr.vmem [resolvable:$true] %s290_s28 }
  0x39   : > { %s1272_s25 = scalar_lea.hbm %s1526_s3, %s1216_s29  ;;  %s923_s11 = scalar_lea.hbm %s1526_s3, 256 }
  0x3a   : > { %s918_s8 = scalar_lea.hbm %s1272_s25, 128  ;;  %p924_p0 = scmp.lt.u32.totalorder %s1272_s25, %s1526_s3 }
  0x3b   : > { %p919_p1 = scmp.ne.s32.totalorder %s1272_s25, %s918_s8  ;;  %p925_p2 = scmp.lt.u32.totalorder %s923_s11, %s918_s8 }
  0x3c   : > { %p927_p5 = scmp.lt.u32.totalorder %s918_s8, %s1272_s25 }
  0x3d   : > { %p921_p3 = pnand %p919_p1, %p1244_p9  ;;  %p926_p4 = por %p925_p2, %p924_p0 }
  0x3f   : > { %p922_p11 = pneg %p921_p3  ;;  %p928_p6 = por %p927_p5, %p926_p4 }
  0x41   : > { %p929_p8 = pnand %p928_p6, %p922_p11 }
  0x43   : > { %932 = shalt.err (!%p929_p8)
}
  0x44   : > { %s933_s27 = scalar_lea.vmem %s291_s28, 128  ;;  %s1129_s17 = smov [#allocation8]  }
  0x45   : > { %p934_p10 = scmp.ne.s32.totalorder %s291_s28, %s933_s27  ;;  %s938_s26 = sshll.u32 %s1129_s17, 4  ;;  %s939_s26 = int_to_ptr.vmem [resolvable:$false] %s938_s26 }
  0x46   : > { %s940_s9 = scalar_lea.vmem %s939_s26, 256  ;;  %p941_p1 = scmp.lt.s32.totalorder %s291_s28, %s939_s26 }
  0x47   : > { %p936_p12 = pnand %p934_p10, %p1244_p9  ;;  %p942_p3 = scmp.lt.s32.totalorder %s940_s9, %s933_s27 }
  0x49   : > { %p937_p13 = pneg %p936_p12  ;;  %p943_p7 = por %p942_p3, %p941_p1 }
  0x4b   : > { %p944_p0 = pnand %p943_p7, %p937_p13 }
  0x4d   : > { %947 = shalt.err (!%p944_p0)
}
  0x4e   : > { %p1527_p2 = scmp.ne.s32.totalorder %s1524_s10, 0  ;;  %s1298_s8 = sadd.s32 4294967295, %s1126_s23  }
  0x4f   : > { %s753_s12 = sadd.s32 4294967294, %s1126_s23   ;;  %p85_p7 = scmp.ne.s32.totalorder %s1110_s19, %s1106_s18 }
  0x50   : > { %813 = dma.hbm_to_vmem [thread:$0]  (!%p1527_p2), %s1272_s25, 128, %s291_s28, %s1277_s7  }
  0x51   : > { %p1508_p11 = scmp.eq.s32.totalorder %s1298_s8, 0  ;;  %p195_p4 = scmp.eq.s32.totalorder %s1298_s8, 1 }
  0x52   : > { %p201_p5 = scmp.eq.s32.totalorder %s753_s12, 1  ;;  %p754_p8 = scmp.ge.s32.totalorder %s1126_s23, 1 }
  0x53   : > { %p1307_p6 = por %p1508_p11, %p85_p7  ;;  %p1529_p10 = scmp.ne.s32.totalorder %s1114_s20, %s1110_s19 }
  0x54   : > { %p1319_p13 = por %p201_p5, %p85_p7  ;;  %p208_p1 = scmp.lt.s32.totalorder %s1126_s23, 3 }
  0x55   : > { %s1528_s11 = scalar_select %p1307_p6, 1, 0 }
  0x56   : > { %p1315_p12 = por %p195_p4, %p1529_p10  ;;  %p1324_p3 = pnand %p754_p8, %p208_p1 }
  0x57   : > { %s1531_s28 = scalar_select %p1319_p13, 1, 0 }
  0x58   : > { %s1530_s25 = scalar_select %p1315_p12, 1, 0 }
  0x59   : > { %s1532_s16 = scalar_select %p1324_p3, 1, 0 }
  0x5a   : > { %s1130_s14 = smov [#allocation2]   ;;  %s1334_s9 = scalar_lea.hbm %s1496_s2, %s1216_s29 }
  0x5b   : > { %s223_s27 = sshll.u32 %s1130_s14, 4  ;;  %p800_p0 = pneg %p1324_p3  ;;  %s1328_s27 = int_to_ptr.vmem [resolvable:$true] %s223_s27 }
  0x5c   : > { %s259_s12 = scalar_lea.vmem [#allocation7], %s1221_s6  ;;  %s1351_s17 = scalar_lea.hbm %s1498_s4, %s1216_s29 }
  0x5d   : > { %s269_s1 = sshll.u32 %s259_s12, 4  ;;  %p1343_p7 = pnand %p800_p0, %p1508_p11  ;;  %s1339_s1 = int_to_ptr.vmem [resolvable:$true] %s269_s1 }
  0x5e   : > { %s948_s26 = scalar_lea.hbm %s1334_s9, 128  ;;  %s953_s12 = scalar_lea.hbm %s1496_s2, 256 }
  0x5f   : > { %s1533_s14 = scalar_select %p1343_p7, 1, 0 }
  0x60   : > { %p949_p4 = scmp.ne.s32.totalorder %s1334_s9, %s948_s26  ;;  %p954_p10 = scmp.lt.u32.totalorder %s1334_s9, %s1496_s2 }
  0x61   : > { %p955_p1 = scmp.lt.u32.totalorder %s953_s12, %s948_s26  ;;  %p957_p11 = scmp.lt.u32.totalorder %s948_s26, %s1334_s9 }
  0x62   : > { %p951_p5 = pnand %p949_p4, %p1244_p9 }
  0x63   : > { %p956_p0 = por %p955_p1, %p954_p10 }
  0x64   : > { %p952_p8 = pneg %p951_p5 }
  0x65   : > { %p958_p13 = por %p957_p11, %p956_p0 }
  0x67   : > { %p959_p12 = pnand %p958_p13, %p952_p8 }
  0x69   : > { %962 = shalt.err (!%p959_p12)
}
  0x6a   : > { %s963_s3 = scalar_lea.vmem %s1339_s1, 128  ;;  %s1131_s22 = smov [#allocation7]  }
  0x6b   : > { %p964_p4 = scmp.ne.s32.totalorder %s1339_s1, %s963_s3  ;;  %s968_s24 = sshll.u32 %s1131_s22, 4  ;;  %s969_s24 = int_to_ptr.vmem [resolvable:$false] %s968_s24 }
  0x6c   : > { %s970_s20 = scalar_lea.vmem %s969_s24, 256  ;;  %p971_p3 = scmp.lt.s32.totalorder %s1339_s1, %s969_s24 }
  0x6d   : > { %p966_p5 = pnand %p964_p4, %p1244_p9  ;;  %p972_p7 = scmp.lt.s32.totalorder %s970_s20, %s963_s3 }
  0x6f   : > { %p967_p6 = pneg %p966_p5  ;;  %p973_p10 = por %p972_p7, %p971_p3 }
  0x71   : > { %p974_p1 = pnand %p973_p10, %p967_p6 }
  0x73   : > { %977 = shalt.err (!%p974_p1)
}
  0x74   : > { %810 = dma.hbm_to_vmem [thread:$0]  (!%p1527_p2), %s1334_s9, 128, %s1339_s1, %s1238_s13  }
  0x75   : > { %s301_s23 = scalar_lea.vmem [#allocation10], %s1221_s6  ;;  %s978_s12 = scalar_lea.hbm %s1494_s0, 32 }
  0x76   : > { %s311_s29 = sshll.u32 %s301_s23, 4  ;;  %p979_p11 = scmp.ne.s32.totalorder %s1494_s0, %s978_s12  ;;  %s312_s29 = int_to_ptr.vmem [resolvable:$true] %s311_s29 }
  0x77   : > { %p1534_p6 = scmp.ne.s32.totalorder %s1533_s14, 0  ;;  %p985_p7 = scmp.lt.u32.totalorder %s978_s12, %s1494_s0 }
  0x79   : > { %p980_p12 = pneg %p1534_p6 }
  0x7b   : > { %p981_p13 = pnand %p980_p12, %p979_p11 }
  0x7d   : > { %p982_p3 = pneg %p981_p13 }
  0x7f   : > { %p987_p8 = pnand %p985_p7, %p982_p3 }
  0x81   : > { %990 = shalt.err (!%p987_p8)
}
  0x82   : > { %s991_s1 = scalar_lea.vmem %s1328_s27, 32  ;;  %p999_p10 = scmp.lt.s32.totalorder %s1328_s27, %s1328_s27 }
  0x83   : > { %p992_p0 = scmp.ne.s32.totalorder %s1328_s27, %s991_s1  ;;  %p1000_p1 = scmp.lt.s32.totalorder %s991_s1, %s991_s1 }
  0x85   : > { %p994_p4 = pnand %p992_p0, %p980_p12  ;;  %p1001_p2 = por %p1000_p1, %p999_p10 }
  0x87   : > { %p995_p5 = pneg %p994_p4 }
  0x89   : > { %p1002_p9 = pnand %p1001_p2, %p995_p5 }
  0x8b   : > { %1005 = shalt.err (!%p1002_p9)
}
  0x8c   : > { %803 = dma.hbm_to_vmem [thread:$0]  (!%p1534_p6), %s1494_s0, 32, %s1328_s27, [#allocation3]  }
  0x8d   : > { %s1006_s9 = scalar_lea.hbm %s1351_s17, 128  ;;  %p1535_p12 = scmp.ne.s32.totalorder %s1525_s15, 0 }
  0x8e   : > { %p1007_p11 = scmp.ne.s32.totalorder %s1351_s17, %s1006_s9  ;;  %s1011_s14 = scalar_lea.hbm %s1498_s4, 256 }
  0x8f   : > { %p1012_p9 = scmp.lt.u32.totalorder %s1351_s17, %s1498_s4  ;;  %p1013_p2 = scmp.lt.u32.totalorder %s1011_s14, %s1006_s9 }
  0x90   : > { %p1009_p13 = pnand %p1007_p11, %p1535_p12  ;;  %p1015_p8 = scmp.lt.u32.totalorder %s1006_s9, %s1351_s17 }
  0x91   : > { %p1014_p7 = por %p1013_p2, %p1012_p9 }
  0x92   : > { %p1010_p3 = pneg %p1009_p13 }
  0x93   : > { %p1016_p0 = por %p1015_p8, %p1014_p7 }
  0x95   : > { %p1017_p4 = pnand %p1016_p0, %p1010_p3 }
  0x97   : > { %1020 = shalt.err (!%p1017_p4)
}
  0x98   : > { %s1021_s27 = scalar_lea.vmem %s312_s29, 128  ;;  %s1132_s22 = smov [#allocation10]  }
  0x99   : > { %p1022_p6 = scmp.ne.s32.totalorder %s312_s29, %s1021_s27  ;;  %s1026_s24 = sshll.u32 %s1132_s22, 4  ;;  %s1027_s24 = int_to_ptr.vmem [resolvable:$false] %s1026_s24 }
  0x9a   : > { %s1028_s3 = scalar_lea.vmem %s1027_s24, 256  ;;  %p1029_p1 = scmp.lt.s32.totalorder %s312_s29, %s1027_s24 }
  0x9b   : > { %p1024_p5 = pnand %p1022_p6, %p1535_p12  ;;  %p1030_p11 = scmp.lt.s32.totalorder %s1028_s3, %s1021_s27 }
  0x9d   : > { %p1025_p10 = pneg %p1024_p5  ;;  %p1031_p13 = por %p1030_p11, %p1029_p1 }
  0x9f   : > { %p1032_p2 = pnand %p1031_p13, %p1025_p10 }
  0xa1   : > { %1035 = shalt.err (!%p1032_p2)
}
  0xa2   : > { %p1536_p9 = scmp.ne.s32.totalorder %s1524_s10, 0  ;;  %p1537_p3 = scmp.ne.s32.totalorder %s1532_s16, 0 }
  0xa3   : > { %p1538_p12 = scmp.eq.s32.totalorder (!%p1537_p3), %s1298_s8, 0 }
  0xa4   : > { %816 = dma.hbm_to_vmem [thread:$0]  (!%p1536_p9), %s1351_s17, 128, %s312_s29, %s1277_s7  }
  0xa5   : > { %320 = sbr.rel (%p1537_p3) target bundleno = 344 (0x158), region = 40 }
  0xac   : > { %1089 = dma.done.wait (%p1538_p12), [#allocation3], 32   ;;  %p1539_p7 = pmov %p1538_p12 }
  0xad   : > { %s326_s15 = sand.u32 1, %s1298_s8   ;;  %s328_s20 = sand.u32 1, %s1110_s19  }
  0xae   : > { %1091 = vsyncadd (%p1539_p7), [#allocation3], 4294967264  ;;  %s1425_s10 = sshll.u32 %s328_s20, 3  ;;  %s327_s7 = scalar_lea.sflag [#allocation6], %s326_s15 }
  0xaf   : > { %s330_s17 = scalar_lea.vmem [#allocation5], %s1425_s10  ;;  %p1540_p8 = scmp.ne.s32.totalorder %s1528_s11, 0 }
  0xb1   : > { %1093 = dma.done.wait (%p1540_p8), %s327_s7, 256  }
  0xb2   : > { %1095 = vsyncadd (%p1540_p8), %s327_s7, 4294967040  ;;  %s339_s16 = scalar_lea.vmem [#allocation7], %s1425_s10  ;;  %s345_s29 = scalar_lea.sflag [#allocation9], %s326_s15 }
  0xb3   : > { %s348_s1 = scalar_lea.vmem [#allocation8], %s1425_s10 }
  0xb4   : > { %1097 = dma.done.wait (%p1540_p8), %s345_s29, 256  }
  0xb5   : > { %1099 = vsyncadd (%p1540_p8), %s345_s29, 4294967040  ;;  %v1133_v0 = vmov 0   ;;  %v1134_v1 = vmov 2   ;;  %v404_v2 = vld [vmem:[#allocation2] sm:$0x3]  ;;  %v1135_v3 = vmov 1   ;;  %v416_v7 = vlaneseq }
  0xb6   : > { %879 = vset.pattern.permute.xlu0 %v1133_v0  ;;  %881 = vset.pattern.permute.xlu1 %v1134_v1  ;;  %v1136_v4 = vmov 3   ;;  %v1137_v5 = vmov 1983009808   ;;  %v405_v10 = vld [vmem:[%s330_s17] sm:$0xff]  ;;  %v437_v12 = vld [vmem:[%s339_s16] sm:$0xff]  ;;  %s357_s8 = scalar_lea.vmem [#allocation10], %s1425_s10 }
  0xb7   : > { %408 = vperm.xlu0 %879, %v404_v2   ;;  %474 = vperm.xlu1 %881, %v404_v2   ;;  %v414_v6 = vunpack.c.l.s4 %v1137_v5  ;;  %v417_v9 = vshrl.u32 %v416_v7, 7  ;;  %v472_v11 = vld [vmem:[%s348_s1] sm:$0xff]  ;;  %v412_v13 = vcombine.high %v405_v10, %v405_v10  ;;  %v507_v15 = vld [vmem:[%s357_s8] sm:$0xff]  ;;  %v443_v17 = vcombine.high %v437_v12, %v437_v12  ;;  %s785_s11 = sshll.u32 %s1118_s21, 7  ;;  %s398_s6 = scalar_lea.vmem [#allocation11], %s1425_s10 }
  0xb8   : > { %v478_v16 = vcombine.high %v472_v11, %v472_v11  ;;  %v513_v18 = vcombine.high %v507_v15, %v507_v15  ;;  %s582_s13 = sshll.u32 %s398_s6, 4  ;;  %s1444_s30 = scalar_lea.hbm %s1499_s5, %s785_s11  ;;  %s1446_s13 = int_to_ptr.vmem [resolvable:$true] %s582_s13 }
  0xb9   : > { %v415_v8 = vunpack.c.0.s8 %v414_v6  ;;  %s566_s14 = scalar_lea.sflag [#allocation4], %s328_s20  ;;  %s1036_s26 = scalar_lea.vmem %s1446_s13, 128 }
  0xba   : > { %p1037_p0 = scmp.ne.s32.totalorder %s1446_s13, %s1036_s26  ;;  %p1541_p4 = scmp.ne.s32.totalorder %s1530_s25, 0 }
  0xbb   : > { %880 = vset.pattern.permute.xlu0 %v1135_v3  ;;  %882 = vset.pattern.permute.xlu1 %v1136_v4  ;;  %v418_v14 = vsub.s32 %v415_v8, %v417_v9  ;;  %s1138_s21 = smov [#allocation11]  }
  0xbc   : > { %439 = vperm.xlu0 %880, %v404_v2   ;;  %509 = vperm.xlu1 %882, %v404_v2   ;;  %p1038_p6 = pnand %p1037_p0, %p1541_p4  ;;  %s1040_s12 = sshll.u32 %s1138_s21, 4  ;;  %s1041_s12 = int_to_ptr.vmem [resolvable:$false] %s1040_s12 }
  0xbd   : > { %v419_v19 = vrot.slane %v405_v10, %v418_v14  ;;  %v426_v20 = vrot.slane %v412_v13, %v418_v14  ;;  %v485_v21 = vrot.slane %v472_v11, %v418_v14  ;;  %v492_v22 = vrot.slane %v478_v16, %v418_v14  ;;  %s1042_s27 = scalar_lea.vmem %s1041_s12, 256  ;;  %p1043_p10 = scmp.lt.s32.totalorder %s1446_s13, %s1041_s12 }
  0xbe   : > { %v450_v23 = vrot.slane %v437_v12, %v418_v14  ;;  %v457_v24 = vrot.slane %v443_v17, %v418_v14  ;;  %v520_v25 = vrot.slane %v507_v15, %v418_v14  ;;  %v527_v26 = vrot.slane %v513_v18, %v418_v14  ;;  %p1039_p5 = pneg %p1038_p6  ;;  %p1044_p1 = scmp.lt.s32.totalorder %s1042_s27, %s1036_s26 }
  0xbf   : > { %v427_v27 = vcombine.high %v419_v19, %v419_v19  ;;  %v428_v28 = vcombine.high %v426_v20, %v426_v20  ;;  %v493_v31 = vcombine.high %v485_v21, %v485_v21  ;;  %v494_v32 = vcombine.high %v492_v22, %v492_v22 }
  0xc0   : > { %883 = vset.pattern.permute.xlu0 %v1136_v4  ;;  %v458_v33 = vcombine.high %v450_v23, %v450_v23  ;;  %v459_v34 = vcombine.high %v457_v24, %v457_v24  ;;  %v528_v35 = vcombine.high %v520_v25, %v520_v25  ;;  %v529_v36 = vcombine.high %v527_v26, %v527_v26  ;;  %p1045_p11 = por %p1044_p1, %p1043_p10 }
  0xc2   : > { %p1046_p13 = pnand %p1045_p11, %p1039_p5 }
 0x136   : > { %v409_v29 = vpop.permute.xlu0 %408  ;;  %v475_v30 = vpop.permute.xlu1 %474 }
 0x137   : > { %v433_v37 = vmul.f32 %v419_v19, %v409_v29  ;;  %v434_v38 = vmul.f32 %v427_v27, %v409_v29  ;;  %v435_v39 = vmul.f32 %v426_v20, %v409_v29  ;;  %v436_v40 = vmul.f32 %v428_v28, %v409_v29 }
 0x138   : > { %v499_v41 = vmul.f32 %v485_v21, %v475_v30  ;;  %v500_v42 = vmul.f32 %v493_v31, %v475_v30  ;;  %v501_v43 = vmul.f32 %v492_v22, %v475_v30  ;;  %v502_v44 = vmul.f32 %v494_v32, %v475_v30 }
 0x13b   : > { %v440_v45 = vpop.permute.xlu0 %439  ;;  %v510_v46 = vpop.permute.xlu1 %509 }
 0x13c   : > { %v464_v47 = vmul.f32 %v450_v23, %v440_v45  ;;  %v465_v48 = vmul.f32 %v458_v33, %v440_v45  ;;  %v466_v49 = vmul.f32 %v457_v24, %v440_v45  ;;  %v467_v50 = vmul.f32 %v459_v34, %v440_v45 }
 0x13d   : > { %v534_v51 = vmul.f32 %v520_v25, %v510_v46  ;;  %v535_v52 = vmul.f32 %v528_v35, %v510_v46  ;;  %v536_v53 = vmul.f32 %v527_v26, %v510_v46  ;;  %v537_v54 = vmul.f32 %v529_v36, %v510_v46 }
 0x13e   : > { %v468_v55 = vadd.f32 %v464_v47, %v433_v37  ;;  %v469_v56 = vadd.f32 %v465_v48, %v434_v38  ;;  %v470_v57 = vadd.f32 %v466_v49, %v435_v39  ;;  %v471_v58 = vadd.f32 %v467_v50, %v436_v40 }
 0x140   : > { %v503_v59 = vadd.f32 %v499_v41, %v468_v55  ;;  %v504_v60 = vadd.f32 %v500_v42, %v469_v56  ;;  %v505_v61 = vadd.f32 %v501_v43, %v470_v57  ;;  %v506_v62 = vadd.f32 %v502_v44, %v471_v58 }
 0x142   : > { %v538_v63 = vadd.f32 %v534_v51, %v503_v59  ;;  %v539_v0 = vadd.f32 %v535_v52, %v504_v60  ;;  %v540_v1 = vadd.f32 %v536_v53, %v505_v61  ;;  %v541_v2 = vadd.f32 %v537_v54, %v506_v62 }
 0x144   : > { %v546_v3 = vcombine.low %v538_v63, %v539_v0  ;;  %v547_v4 = vcombine.low %v540_v1, %v541_v2 }
 0x146   : > { %v554_v5 = vrot.slane %v546_v3, %v418_v14  ;;  %v561_v6 = vrot.slane %v547_v4, %v418_v14 }
 0x148   : > { %v562_v7 = vcombine.low %v554_v5, %v561_v6 }
 0x14a   : > { %564 = vst [vmem:[%s398_s6] sm:$0xff] %v562_v7 }
 0x14b   : > { %1049 = shalt.err (!%p1046_p13)
}
 0x14c   : > { %s1050_s22 = scalar_lea.hbm %s1444_s30, 128  ;;  %s1054_s15 = scalar_lea.hbm %s1499_s5, 256 }
 0x14d   : > { %p1051_p2 = scmp.ne.s32.totalorder %s1444_s30, %s1050_s22  ;;  %p1055_p12 = scmp.lt.u32.totalorder %s1444_s30, %s1499_s5 }
 0x14e   : > { %p1056_p7 = scmp.lt.u32.totalorder %s1054_s15, %s1050_s22  ;;  %p1058_p0 = scmp.lt.u32.totalorder %s1050_s22, %s1444_s30 }
 0x14f   : > { %p1052_p9 = pnand %p1051_p2, %p1541_p4 }
 0x150   : > { %p1057_p8 = por %p1056_p7, %p1055_p12 }
 0x151   : > { %p1053_p3 = pneg %p1052_p9 }
 0x152   : > { %p1059_p6 = por %p1058_p0, %p1057_p8 }
 0x154   : > { %p1060_p5 = pnand %p1059_p6, %p1053_p3 }
 0x156   : > { %1063 = shalt.err (!%p1060_p5)
}
 0x157   : > { %798 = dma.vmem_to_hbm [thread:$0]  (%p1541_p4), %s1446_s13, 128, %s1444_s30, %s566_s14  }
 0x158 PF: > { %s1542_s7 = sld [smem:[#allocation18_spill]]  ;;  %s594_s17 = sand.u32 1, %s1106_s18  }
 0x159   : > { %p1543_p10 = scmp.ne.s32.totalorder %s1531_s28, 0  ;;  %s595_s16 = scalar_lea.sflag [#allocation4], %s594_s17 }
 0x15e   : > { %p1544_p1 = scmp.ge.s32.totalorder %s1542_s7, 2 }
 0x160   : > { %p818_p11 = pnand %p1544_p1, %p1543_p10 }
 0x162   : > { %1101 = dma.done.wait (!%p818_p11), %s595_s16, 128  }
 0x163   : > { %1103 = vsyncadd (!%p818_p11), %s595_s16, 4294967168  ;;  %s25_s23 = sadd.s32 1, %s1542_s7   ;;  %s1545_s29 = sld [smem:[#allocation16_spill]] }
 0x164   : > { %p22_p13 = scmp.ge.s32.totalorder %s25_s23, 4   ;;  %s1546_s20 = sld [smem:[#allocation20_spill]] }
 0x165   : > { %s1547_s21 = sld [smem:[#allocation17_spill]]  ;;  %s1548_s22 = sld [smem:[#allocation19_spill]] }
 0x166   : > { %s1549_s18 = smov %s1110_s19  ;;  %24 = sbr.rel (!%p22_p13) target bundleno = 12 (0xc), region = 126 }
 0x169   : > { %s1550_s19 = smov %s1545_s29 }
 0x16d   :  { %600 = vsyncpa [#allocation3], 1 }
 0x16e   :  { %602 = vsyncpa [#allocation3 + $0x1], 1 }
 0x16f   :  { %603 = vsyncpa [#allocation6], 1 }
 0x170   :  { %605 = vsyncpa [#allocation6 + $0x1], 1 }
 0x171   :  { %606 = vsyncpa [#allocation9], 1 }
 0x172   :  { %608 = vsyncpa [#allocation9 + $0x1], 1 }
 0x173   :  { %609 = vsyncpa [#allocation4], 1 }
 0x174   :  { %611 = vsyncpa [#allocation4 + $0x1], 1 }

</bundles_post_ra>
